<compile_context>
chip_gen: v7x
topology: tpu7x:2x2x1
jax: 0.10.0
libtpu: 0.0.40
codegen_flags: <defaults>
</compile_context>

<pallas_src>
import functools

import jax
import jax.numpy as jnp
from jax.experimental import pallas as pl
from jax.experimental.pallas import tpu as pltpu


def _coupling_kernel(x_ref, w_ref, b_ref, y_tr_ref, ld_ref, *, d: int, r: int):
    """One batch tile: params matmul + affine transform + log-det reduction.

    x_ref    : (TB, n_in) input tile  [identity half | transformed half]
    w_ref    : (d, 2r)    resident weights
    b_ref    : (1, 2r)    resident bias
    y_tr_ref : (TB, r)    transformed-half of y (identity half comes from the
                          aliased input buffer and is never re-written)
    ld_ref   : (TB, 1)    per-row sum of log-dets
    """
    x = x_ref[...]
    id_x = x[:, :d]          # masked (identity) half        -- 128-aligned slice
    tr_x = x[:, d:]          # inv-masked (transformed) half -- 128-aligned slice

    # get_params: params = id_x @ W + b  -> (shift, log_scale), each (TB, r)
    params = jnp.dot(id_x, w_ref[...],
                     preferred_element_type=jnp.float32) + b_ref[...]
    shift = params[:, :r]
    log_scale = params[:, r:]

    # transform on the inv-masked half.
    y_tr_ref[...] = (tr_x * jnp.exp(log_scale) + shift).astype(y_tr_ref.dtype)

    # log_det is zero on the masked half, log_scale on the inv-masked half;
    # sum over the feature axis == sum of log_scale.
    ld_ref[...] = jnp.sum(log_scale, axis=-1, keepdims=True).astype(ld_ref.dtype)


def _coupling_call(x, W, b, *, tile_b):
    B, n_in = x.shape
    d = n_in // 2
    r = n_in - d

    grid = (B // tile_b,)

    y, ld = pl.pallas_call(
        functools.partial(_coupling_kernel, d=d, r=r),
        grid=grid,
        in_specs=[
            pl.BlockSpec((tile_b, n_in), lambda i: (i, 0)),  # x batch tile
            pl.BlockSpec((d, 2 * r), lambda i: (0, 0)),      # W (resident)
            pl.BlockSpec((1, 2 * r), lambda i: (0, 0)),      # b (resident)
        ],
        out_specs=(
            # Only the transformed columns [d, n_in) are ever written; the
            # identity half of y lives untouched in the aliased x buffer.
            # (d == r, so feature-block index 1 == element offset d.)
            pl.BlockSpec((tile_b, r), lambda i: (i, 1)),
            pl.BlockSpec((tile_b, 1), lambda i: (i, 0)),
        ),
        out_shape=(
            jax.ShapeDtypeStruct((B, n_in), x.dtype),
            jax.ShapeDtypeStruct((B, 1), x.dtype),
        ),
        input_output_aliases={0: 0},  # y aliases x: in-place transformed half
        compiler_params=pltpu.CompilerParams(
            dimension_semantics=("parallel",),  # shard batch tiles across TCs (v7x)
        ),
    )(x, W, b)
    return y, ld


@functools.partial(jax.jit, static_argnames=("tile_b",), donate_argnums=(0,))
def coupling_forward(x, W, b, tile_b=1024):
    """x: (B, n_in) f32; W: (d, 2r) f32; b: (1, 2r) f32 -> (y (B, n_in), log_det (B,)).

    x is donated: the returned y reuses x's HBM buffer (identity half in place).
    """
    B, n_in = x.shape
    d = n_in // 2
    if n_in % 2 != 0 or d % 128 != 0:
        # TODO(synk): general n_in would require lane-padding the two halves to
        # 128 multiples; the demo/spec shapes keep d == r == multiple of 128.
        raise ValueError("kernel requires n_in even and n_in//2 a multiple of 128")

    tb = min(tile_b, B)
    b_padded = pl.cdiv(B, tb) * tb
    x_in = x if b_padded == B else jnp.pad(x, ((0, b_padded - B), (0, 0)))

    y, ld = _coupling_call(x_in, W, b, tile_b=tb)
    if b_padded != B:
        y = y[:B]
        ld = ld[:B]
    return y, ld[:, 0]


def coupling_forward_ref(x, W, b):
    """Pure-JAX reference mirroring the PyTorch semantics."""
    n_in = x.shape[1]
    d = n_in // 2
    r = n_in - d
    id_x = x[:, :d]
    tr_x = x[:, d:]
    params = id_x @ W + b
    shift, log_scale = params[:, :r], params[:, r:]
    y = jnp.concatenate([id_x, tr_x * jnp.exp(log_scale) + shift], axis=1)
    log_det = jnp.concatenate([jnp.zeros_like(id_x), log_scale], axis=1)
    return y, jnp.sum(log_det, axis=-1)


if __name__ == "__main__":
    B, n_in = 8, 256          # small, lane-aligned (d = r = 128)
    d = n_in // 2
    r = n_in - d

    key = jax.random.PRNGKey(0)
    kx, kw, kb = jax.random.split(key, 3)
    x = jax.random.normal(kx, (B, n_in), dtype=jnp.float32)
    # deterministic small init so exp(log_scale) stays well conditioned
    W = 0.01 * jax.random.normal(kw, (d, 2 * r), dtype=jnp.float32)
    b = 0.01 * jax.random.normal(kb, (1, 2 * r), dtype=jnp.float32)

    # Compute the reference FIRST: x is donated to the Pallas call below.
    y_ref, ld_ref = coupling_forward_ref(x, W, b)
    jax.block_until_ready((y_ref, ld_ref))

    y, log_det = coupling_forward(x, W, b)
    jax.block_until_ready((y, log_det))

    assert jnp.allclose(y, y_ref, atol=1e-5, rtol=1e-5)
    assert jnp.allclose(log_det, ld_ref, atol=1e-5, rtol=1e-5)

    print("KERNEL_OK")
</pallas_src>

<mosaic_0001>
module attributes {stable_mosaic.version = 11 : i64} {
  func.func @_coupling_kernel(%arg0: i32, %arg1: memref<8x256xf32, #tpu.memory_space<vmem>>, %arg2: memref<128x256xf32, #tpu.memory_space<vmem>>, %arg3: memref<1x256xf32, #tpu.memory_space<vmem>>, %arg4: memref<8x128xf32, #tpu.memory_space<vmem>>, %arg5: memref<8x1xf32, #tpu.memory_space<vmem>>) attributes {dimension_semantics = [#tpu.dimension_semantics<parallel>], iteration_bounds = array<i64: 1>, scalar_prefetch = 0 : i64, scratch_operands = 0 : i64, tpu.core_type = #tpu.core_type<tc>, window_params = [{transform_indices = @transform_0, window_bounds = array<i64: 8, 256>}, {pipeline_mode = #tpu.pipeline_mode<synchronous>, transform_indices = @transform_1, window_bounds = array<i64: 128, 256>}, {pipeline_mode = #tpu.pipeline_mode<synchronous>, transform_indices = @transform_2, window_bounds = array<i64: 1, 256>}, {transform_indices = @transform_3, window_bounds = array<i64: 8, 128>}, {transform_indices = @transform_4, window_bounds = array<i64: 8, 1>}]} {
    %c0 = arith.constant 0 : index
    %c0_0 = arith.constant 0 : index
    %0 = vector.load %arg1[%c0, %c0_0] : memref<8x256xf32, #tpu.memory_space<vmem>>, vector<8x256xf32>
    %1 = vector.extract_strided_slice %0 {offsets = [0, 0], sizes = [8, 128], strides = [1, 1]} : vector<8x256xf32> to vector<8x128xf32>
    %2 = vector.extract_strided_slice %0 {offsets = [0, 128], sizes = [8, 128], strides = [1, 1]} : vector<8x256xf32> to vector<8x128xf32>
    %c0_1 = arith.constant 0 : index
    %c0_2 = arith.constant 0 : index
    %3 = vector.load %arg2[%c0_1, %c0_2] : memref<128x256xf32, #tpu.memory_space<vmem>>, vector<128x256xf32>
    %cst = arith.constant dense<0.000000e+00> : vector<8x256xf32>
    %4 = tpu.matmul %1, %3, %cst {dimension_numbers = #tpu.dot_dimension_numbers<[1], [0], [0], [1], [0, 0, 1, 1], [], []>} : vector<8x128xf32>, vector<128x256xf32>, vector<8x256xf32> -> vector<8x256xf32>
    %c0_3 = arith.constant 0 : index
    %c0_4 = arith.constant 0 : index
    %5 = vector.load %arg3[%c0_3, %c0_4] : memref<1x256xf32, #tpu.memory_space<vmem>>, vector<1x256xf32>
    %6 = vector.broadcast %5 : vector<1x256xf32> to vector<8x256xf32>
    %7 = arith.addf %4, %6 : vector<8x256xf32>
    %8 = vector.extract_strided_slice %7 {offsets = [0, 0], sizes = [8, 128], strides = [1, 1]} : vector<8x256xf32> to vector<8x128xf32>
    %9 = vector.extract_strided_slice %7 {offsets = [0, 128], sizes = [8, 128], strides = [1, 1]} : vector<8x256xf32> to vector<8x128xf32>
    %10 = math.exp %9 : vector<8x128xf32>
    %11 = arith.mulf %2, %10 : vector<8x128xf32>
    %12 = arith.addf %11, %8 : vector<8x128xf32>
    %c0_5 = arith.constant 0 : index
    %c0_6 = arith.constant 0 : index
    %13 = vector.load %arg4[%c0_5, %c0_6] : memref<8x128xf32, #tpu.memory_space<vmem>>, vector<8x128xf32>
    tpu.vector_store %arg4[%c0_5, %c0_6], %12 {strides = array<i32>} : memref<8x128xf32, #tpu.memory_space<vmem>>, vector<8x128xf32>,
    %cst_7 = arith.constant dense<0.000000e+00> : vector<8xf32>
    %14 = vector.multi_reduction <add>, %9, %cst_7 [1] : vector<8x128xf32> to vector<8xf32>
    %15 = vector.shape_cast %14 : vector<8xf32> to vector<8x1xf32>
    %c0_8 = arith.constant 0 : index
    %c0_9 = arith.constant 0 : index
    %16 = vector.load %arg5[%c0_8, %c0_9] : memref<8x1xf32, #tpu.memory_space<vmem>>, vector<8x1xf32>
    tpu.vector_store %arg5[%c0_8, %c0_9], %15 {strides = array<i32>} : memref<8x1xf32, #tpu.memory_space<vmem>>, vector<8x1xf32>,
    return
  }
  func.func @transform_0(%arg0: i32) -> (i32, i32) {
    %c0_i32 = arith.constant 0 : i32
    %c0_i32_0 = arith.constant 0 : i32
    return %arg0, %c0_i32 : i32, i32
  }
  func.func @transform_1(%arg0: i32) -> (i32, i32) {
    %c0_i32 = arith.constant 0 : i32
    %c0_i32_0 = arith.constant 0 : i32
    %c0_i32_1 = arith.constant 0 : i32
    return %c0_i32, %c0_i32_0 : i32, i32
  }
  func.func @transform_2(%arg0: i32) -> (i32, i32) {
    %c0_i32 = arith.constant 0 : i32
    %c0_i32_0 = arith.constant 0 : i32
    %c0_i32_1 = arith.constant 0 : i32
    return %c0_i32, %c0_i32_0 : i32, i32
  }
  func.func @transform_3(%arg0: i32) -> (i32, i32) {
    %c1_i32 = arith.constant 1 : i32
    %c0_i32 = arith.constant 0 : i32
    return %arg0, %c1_i32 : i32, i32
  }
  func.func @transform_4(%arg0: i32) -> (i32, i32) {
    %c0_i32 = arith.constant 0 : i32
    %c0_i32_0 = arith.constant 0 : i32
    return %arg0, %c0_i32 : i32, i32
  }
}

</mosaic_0001>

<bundles_post_ra>
// kernel: coupling_forward.1
= control target key start
LH: loop header
LB: loop body
LE: loop exit
PB: predicated region body
PF: predicated region fallthrough
CT: control target
= control target key end

     0   :  { %10 = vsyncpa [#allocation3], 0  ;;  %s382_s0 = inlined_call_operand.hbm [shape: f32[8,256], index: 0, kind: input, shape index: {}, may-alias: {0,3}]   ;;  %s383_s1 = inlined_call_operand.hbm [shape: f32[128,256], index: 1, kind: input, shape index: {}]   ;;  %s384_s2 = inlined_call_operand.vmem [shape: f32[1,256], index: 2, kind: input, shape index: {}]   ;;  %s385_s3 = inlined_call_operand.hbm [shape: f32[8,256], index: 3, kind: output, shape index: {0}, may-alias: {0,3}]   ;;  %s386_s4 = inlined_call_operand.vmem [shape: f32[8,1], index: 4, kind: output, shape index: {1}]  }
   0x1   :  { %11 = vsyncpa [#allocation6], 0 }
   0x2   :  { %12 = vsyncpa [#allocation4], 0  ;;  %s305_s15 = smov [#allocation2]   ;;  %s306_s17 = smov [#allocation5]  }
   0x3   :  { %s19_s16 = sshll.u32 %s305_s15, 4  ;;  %s28_s18 = sshll.u32 %s306_s17, 4  ;;  %s20_s16 = int_to_ptr.vmem [resolvable:$true] %s19_s16  ;;  %s336_s18 = int_to_ptr.vmem [resolvable:$true] %s28_s18 }
   0x4   :  { %s230_s21 = scalar_lea.hbm %s382_s0, 256 }
   0x5   :  { %p231_p0 = scmp.ne.s32.totalorder %s382_s0, %s230_s21  ;;  %p234_p1 = scmp.lt.u32.totalorder %s230_s21, %s382_s0 }
   0x7   :  { %p236_p2 = pnand %p234_p1, %p231_p0 }
   0x9   :  { %239 = shalt.err (!%p236_p2)
}
   0xa   :  { %s240_s26 = scalar_lea.vmem %s20_s16, 256  ;;  %p245_p4 = scmp.lt.s32.totalorder %s20_s16, %s20_s16 }
   0xb   :  { %p241_p3 = scmp.ne.s32.totalorder %s20_s16, %s240_s26  ;;  %p246_p5 = scmp.lt.s32.totalorder %s240_s26, %s240_s26 }
   0xd   :  { %p247_p6 = por %p246_p5, %p245_p4 }
   0xf   :  { %p248_p7 = pnand %p247_p6, %p241_p3 }
  0x11   :  { %251 = shalt.err (!%p248_p7)
}
  0x12   :  { %22 = dma.hbm_to_vmem [thread:$0]  %s382_s0, 256, %s20_s16, [#allocation3]  }
  0x13   :  { %s252_s5 = scalar_lea.hbm %s383_s1, 4096 }
  0x14   :  { %p253_p8 = scmp.ne.s32.totalorder %s383_s1, %s252_s5  ;;  %p256_p9 = scmp.lt.u32.totalorder %s252_s5, %s383_s1 }
  0x16   :  { %p258_p10 = pnand %p256_p9, %p253_p8 }
  0x18   :  { %261 = shalt.err (!%p258_p10)
}
  0x19   :  { %s262_s10 = scalar_lea.vmem %s336_s18, 4096  ;;  %p267_p12 = scmp.lt.s32.totalorder %s336_s18, %s336_s18 }
  0x1a   :  { %p263_p11 = scmp.ne.s32.totalorder %s336_s18, %s262_s10  ;;  %p268_p13 = scmp.lt.s32.totalorder %s262_s10, %s262_s10 }
  0x1c   :  { %p269_p0 = por %p268_p13, %p267_p12 }
  0x1e   :  { %p270_p1 = pnand %p269_p0, %p263_p11 }
  0x20   :  { %273 = shalt.err (!%p270_p1)
}
  0x21   :  { %s307_s0 = smov 256   ;;  %s308_s11 = smov 16  }
  0x22   :  { %34 = dma.hbm_to_vmem [thread:$0]  %s383_s1, 4096, %s336_s18, [#allocation6], %s307_s0, %s307_s0, %s308_s11  }
  0x23   :  { %299 = dma.done.wait [#allocation3], 256  }
  0x24   :  { %300 = vsyncadd [#allocation3], 4294967040 }
  0x25   :  { %301 = dma.done.wait [#allocation6], 4096  }
  0x26   :  { %302 = vsyncadd [#allocation6], 4294963200  ;;  %v309_v0 = vmov 0.0   ;;  %v46_v1 = vld [vmem:[#allocation5 + $0x8] sm:$0xff]  ;;  %v48_v2 = vld [vmem:[#allocation5 + $0x18] sm:$0xff]  ;;  %v79_v50 = vlaneseq  ;;  %s310_s15 = smov [#allocation7]  }
  0x27   :  { %153 = vmatprep.mubr.f32.mxu0 %v309_v0  ;;  %v45_v3 = vld [vmem:[#allocation5] sm:$0xff]  ;;  %v190_v4 = vpack.c.bf16 %v48_v2, %v46_v1  ;;  %v47_v5 = vld [vmem:[#allocation5 + $0x10] sm:$0xff]  ;;  %v50_v6 = vld [vmem:[#allocation5 + $0x28] sm:$0xff]  ;;  %s176_s16 = sshll.u32 %s310_s15, 4  ;;  %s177_s16 = int_to_ptr.vmem [resolvable:$true] %s176_s16 }
  0x28   :  { %v52_v7 = vld [vmem:[#allocation5 + $0x38] sm:$0xff]  ;;  %v192_v8 = vpack.c.bf16 %v47_v5, %v45_v3  ;;  %v49_v10 = vld [vmem:[#allocation5 + $0x20] sm:$0xff]  ;;  %v51_v11 = vld [vmem:[#allocation5 + $0x30] sm:$0xff]  ;;  %v80_v51 = vshrl.u32 %v79_v50, 7  ;;  %s274_s19 = scalar_lea.vmem %s177_s16, 128  ;;  %p279_p3 = scmp.lt.s32.totalorder %s177_s16, %s177_s16 }
  0x29   :  { %v194_v9 = vpack.c.bf16 %v52_v7, %v50_v6  ;;  %v54_v12 = vld [vmem:[#allocation5 + $0x48] sm:$0xff]  ;;  %191 = vmatprep.subr.bf16.mxu0 %v190_v4  ;;  %v56_v13 = vld [vmem:[#allocation5 + $0x58] sm:$0xff]  ;;  %v196_v14 = vpack.c.bf16 %v51_v11, %v49_v10  ;;  %v53_v16 = vld [vmem:[#allocation5 + $0x40] sm:$0xff]  ;;  %p275_p2 = scmp.ne.s32.totalorder %s177_s16, %s274_s19  ;;  %p280_p4 = scmp.lt.s32.totalorder %s274_s19, %s274_s19 }
  0x2a   :  { %193 = vmatpush1.bf16.msra.mxu0 %v192_v8  ;;  %v198_v15 = vpack.c.bf16 %v56_v13, %v54_v12  ;;  %v55_v17 = vld [vmem:[#allocation5 + $0x50] sm:$0xff]  ;;  %v58_v18 = vld [vmem:[#allocation5 + $0x68] sm:$0xff]  ;;  %v60_v19 = vld [vmem:[#allocation5 + $0x78] sm:$0xff]  ;;  %v85_v52 = vsub.s32 1, %v80_v51  ;;  %v81_v59 = vsub.s32 0, %v80_v51 }
  0x2b   :  { %195 = vmatprep.subr.bf16.mxu0 %v194_v9  ;;  %v200_v20 = vpack.c.bf16 %v55_v17, %v53_v16  ;;  %v202_v21 = vpack.c.bf16 %v60_v19, %v58_v18  ;;  %v57_v22 = vld [vmem:[#allocation5 + $0x60] sm:$0xff]  ;;  %v59_v23 = vld [vmem:[#allocation5 + $0x70] sm:$0xff]  ;;  %v62_v24 = vld [vmem:[#allocation5 + $0x88] sm:$0xff]  ;;  %p281_p5 = por %p280_p4, %p279_p3 }
  0x2c   :  { %v64_v25 = vld [vmem:[#allocation5 + $0x98] sm:$0xff]  ;;  %v204_v26 = vpack.c.bf16 %v59_v23, %v57_v22  ;;  %v61_v28 = vld [vmem:[#allocation5 + $0x80] sm:$0xff]  ;;  %v63_v29 = vld [vmem:[#allocation5 + $0x90] sm:$0xff] }
  0x2d   :  { %v206_v27 = vpack.c.bf16 %v64_v25, %v62_v24  ;;  %v66_v30 = vld [vmem:[#allocation5 + $0xa8] sm:$0xff]  ;;  %v68_v31 = vld [vmem:[#allocation5 + $0xb8] sm:$0xff]  ;;  %v208_v32 = vpack.c.bf16 %v63_v29, %v61_v28  ;;  %v65_v34 = vld [vmem:[#allocation5 + $0xa0] sm:$0xff]  ;;  %p282_p6 = pnand %p281_p5, %p275_p2 }
  0x2e   :  { %197 = vmatpush1.bf16.msra.mxu0 %v196_v14  ;;  %v210_v33 = vpack.c.bf16 %v68_v31, %v66_v30  ;;  %v67_v35 = vld [vmem:[#allocation5 + $0xb0] sm:$0xff]  ;;  %v70_v36 = vld [vmem:[#allocation5 + $0xc8] sm:$0xff]  ;;  %v72_v37 = vld [vmem:[#allocation5 + $0xd8] sm:$0xff] }
  0x2f   :  { %199 = vmatprep.subr.bf16.mxu0 %v198_v15  ;;  %v212_v38 = vpack.c.bf16 %v67_v35, %v65_v34  ;;  %v214_v39 = vpack.c.bf16 %v72_v37, %v70_v36  ;;  %v69_v40 = vld [vmem:[#allocation5 + $0xc0] sm:$0xff]  ;;  %v71_v41 = vld [vmem:[#allocation5 + $0xd0] sm:$0xff]  ;;  %v74_v42 = vld [vmem:[#allocation5 + $0xe8] sm:$0xff] }
  0x30   :  { %v76_v43 = vld [vmem:[#allocation5 + $0xf8] sm:$0xff]  ;;  %v216_v44 = vpack.c.bf16 %v71_v41, %v69_v40  ;;  %v73_v46 = vld [vmem:[#allocation5 + $0xe0] sm:$0xff]  ;;  %v75_v47 = vld [vmem:[#allocation5 + $0xf0] sm:$0xff] }
  0x31   :  { %v218_v45 = vpack.c.bf16 %v76_v43, %v74_v42  ;;  %v220_v48 = vpack.c.bf16 %v75_v47, %v73_v46  ;;  %v43_v49 = vld [vmem:[#allocation2] sm:$0xff]  ;;  %v44_v61 = vld [vmem:[#allocation2 + $0x8] sm:$0xff] }
  0x32   :  { %201 = vmatpush1.bf16.msra.mxu0 %v200_v20  ;;  %v77_v53 = vld [vmem:[%s384_s2] sm:$0x3]  ;;  %s174_s2 = scalar_lea.hbm %s385_s3, 128 }
  0x33   :  { %203 = vmatprep.subr.bf16.mxu0 %v202_v21  ;;  %v86_v54 = vrot.slane %v77_v53, %v85_v52  ;;  %v82_v60 = vrot.slane %v77_v53, %v81_v59 }
  0x36   :  { %205 = vmatpush1.bf16.msra.mxu0 %v204_v26 }
  0x37   :  { %207 = vmatprep.subr.bf16.mxu0 %v206_v27 }
  0x3a   :  { %209 = vmatpush1.bf16.msra.mxu0 %v208_v32 }
  0x3b   :  { %211 = vmatprep.subr.bf16.mxu0 %v210_v33 }
  0x3e   :  { %213 = vmatpush1.bf16.msra.mxu0 %v212_v38 }
  0x3f   :  { %215 = vmatprep.subr.bf16.mxu0 %v214_v39 }
  0x42   :  { %217 = vmatpush1.bf16.msra.mxu0 %v216_v44 }
  0x43   :  { %219 = vmatprep.subr.bf16.mxu0 %v218_v45 }
  0x46   :  { %221 = vmatpush1.bf16.msra.mxu0 %v220_v48 }
  0x49   :  { %154 = vmatmul.mubr.f32.vlgmr.msra.gmra.mrb[0].mxu0 %v43_v49 }
 0x11c   :  { %v155_v55 = vpop.f32.mrb[0].mxu0 }
 0x11d   :  { %v157_v56 = vpop.f32.mrb[1].mxu0  ;;  %v156_v63 = vadd.f32 %v155_v55, %v82_v60 }
 0x11e   :  { %v158_v57 = vadd.f32 %v157_v56, %v86_v54 }
 0x120   :  { %v160_v58 = vmul.f32 1.442695, %v158_v57  ;;  %165 = vadd.xlane.f32.xlu0 %v158_v57 }
 0x122   :  { %228 = vpow2.f32 %v160_v58 }
 0x12c   :  { %v229_v62 = vpop.eup %228 }
 0x12d   :  { %v162_v0 = vmul.f32 %v229_v62, %v44_v61 }
 0x12f   :  { %v163_v1 = vadd.f32 %v162_v0, %v156_v63 }
 0x131   :  { %164 = vst [vmem:[#allocation7] sm:$0xff] %v163_v1 }
 0x132   :  { %285 = shalt.err (!%p282_p6)
}
 0x133   :  { %s298_s22 = scalar_lea.hbm %s385_s3, 256  ;;  %p289_p8 = scmp.lt.u32.totalorder %s174_s2, %s385_s3 }
 0x134   :  { %p287_p7 = scmp.ne.s32.totalorder %s174_s2, %s298_s22  ;;  %p290_p9 = scmp.lt.u32.totalorder %s298_s22, %s298_s22 }
 0x135   :  { %p292_p11 = scmp.lt.u32.totalorder %s298_s22, %s174_s2 }
 0x136   :  { %p291_p10 = por %p290_p9, %p289_p8 }
 0x138   :  { %p293_p12 = por %p292_p11, %p291_p10 }
 0x13a   :  { %p294_p13 = pnand %p293_p12, %p287_p7 }
 0x13c   :  { %297 = shalt.err (!%p294_p13)
}
 0x13d   :  { %179 = dma.vmem_to_hbm [thread:$0]  %s177_s16, 128, %s174_s2, [#allocation4]   ;;  %vm167_vm0 = vcmask 7168  }
 0x1ad   :  { %v166_v2 = vpop.xlane.xlu0 %165 }
 0x1ae   :  { %168 = vst.msk [vmem:[%s386_s4] sm:$0xff] %vm167_vm0, %v166_v2 }
 0x1af   :  { %303 = dma.done.wait [#allocation4], 128  }
 0x1b0   :  { %304 = vsyncadd [#allocation4], 4294967168 }
 0x1b1   :  { %187 = vsyncpa [#allocation3], 1 }
 0x1b2   :  { %188 = vsyncpa [#allocation6], 1 }
 0x1b3   :  { %189 = vsyncpa [#allocation4], 1 }

</bundles_post_ra>
